<compile_context>
chip_gen: v5e
topology: v5e:2x2
jax: 0.10.0
libtpu: 0.0.40
codegen_flags: <defaults>
</compile_context>

<pallas_src>
import functools

import jax
import jax.numpy as jnp
from jax import lax
from jax.experimental import pallas as pl
from jax.experimental.pallas import tpu as pltpu


def _round_up(x, m):
    return (x + m - 1) // m * m


_LANE = 128
_VMEM_LIMIT = 48 * 1024 * 1024          # <= ~48 MiB: safe on v7x, fine on v5e/v6e
_RESIDENT_BUDGET = 24 * 1024 * 1024     # budget for a double-buffered resident operand


# ---------------------------------------------------------------- kernels ---

def xw_kernel(x_ref, wt_ref, o_ref, acc_ref):
    """XW = X @ Wt; grid = (N tiles, F_in reduction tiles)."""
    k = pl.program_id(1)

    @pl.when(k == 0)
    def _():
        acc_ref[...] = jnp.zeros_like(acc_ref)

    acc_ref[...] += jnp.dot(x_ref[...], wt_ref[...],
                            preferred_element_type=jnp.float32)

    @pl.when(k == pl.num_programs(1) - 1)
    def _():
        o_ref[...] = acc_ref[...].astype(o_ref.dtype)


def edge_agg_kernel(b_ref, xw_ref, se_ref, xe_ref, acc_ref, *, k_rows, resident):
    """Xe = scale_e * (B01 @ XW); grid = (E tiles, N reduction tiles)."""
    k = pl.program_id(1)

    @pl.when(k == 0)
    def _():
        acc_ref[...] = jnp.zeros_like(acc_ref)

    # int8 incidence counts -> bf16 for the MXU (cast hides under the DMA).
    b = b_ref[...].astype(jnp.bfloat16)
    if resident:
        row0 = pl.multiple_of(k * k_rows, k_rows)
        xw = xw_ref[pl.ds(row0, k_rows), :]
    else:
        xw = xw_ref[...]
    acc_ref[...] += jnp.dot(b, xw, preferred_element_type=jnp.float32)

    @pl.when(k == pl.num_programs(1) - 1)
    def _():
        # mean (1/count) and degE applied as a single f32 VPU broadcast-mul
        xe_ref[...] = (acc_ref[...] * se_ref[...]).astype(xe_ref.dtype)


def node_agg_kernel(c_ref, xe_ref, dv_ref, o_ref, acc_ref, *,
                    k_rows, resident, use_norm):
    """out = normalize_l2(degV * (C01 @ Xe)); grid = (N tiles, E reduction)."""
    k = pl.program_id(1)

    @pl.when(k == 0)
    def _():
        acc_ref[...] = jnp.zeros_like(acc_ref)

    c = c_ref[...].astype(jnp.bfloat16)
    if resident:
        row0 = pl.multiple_of(k * k_rows, k_rows)
        xe = xe_ref[pl.ds(row0, k_rows), :]
    else:
        xe = xe_ref[...]
    acc_ref[...] += jnp.dot(c, xe, preferred_element_type=jnp.float32)

    @pl.when(k == pl.num_programs(1) - 1)
    def _():
        xv = acc_ref[...] * dv_ref[...]
        if use_norm:
            # padded feature lanes are exactly zero, so the row norm only
            # sees the real H*C features.  rsqrt -> EUP slot; zero row -> 0.
            ss = jnp.sum(xv * xv, axis=-1, keepdims=True)
            scale = jnp.where(ss > 0.0, lax.rsqrt(ss), 0.0)
            xv = xv * scale
        o_ref[...] = xv.astype(o_ref.dtype)


# ---------------------------------------------------------------- wrapper ---

def unigcn_conv(X, Wt, vertex, edges, degE, degV, num_edges, *, use_norm=True):
    """UniGCNConv forward.  X [N,F_in], Wt [F_in,HC], degE [E,1], degV [N,1]."""
    N, F_in = X.shape
    HC = Wt.shape[1]
    E = int(num_edges)

    HCp = _round_up(HC, _LANE)                      # lane-dense features
    tn = min(512, _round_up(N, _LANE))              # N tile (output k3, K in k2)
    te = min(512, _round_up(E, _LANE))              # E tile (output k2, K in k3)
    tf = min(256, _round_up(F_in, _LANE))           # F_in reduction tile (k1)
    Np = _round_up(N, tn)
    Ep = _round_up(E, te)
    Fp = _round_up(F_in, tf)
    n_tiles, e_tiles, f_tiles = Np // tn, Ep // te, Fp // tf

    # ---- structural glue (plain JAX): padding + int8 incidence matrices ----
    Xb = jnp.zeros((Np, Fp), jnp.bfloat16).at[:N, :F_in].set(
        X.astype(jnp.bfloat16))
    Wtb = jnp.zeros((Fp, HCp), jnp.bfloat16).at[:F_in, :HC].set(
        Wt.astype(jnp.bfloat16))

    # Incidence counts stored as int8 (dominant HBM stream of kernels 2/3);
    # exact as long as no (vertex, edge) pair repeats more than 127 times.
    B01 = jnp.zeros((Ep, Np), jnp.int8).at[edges, vertex].add(1)   # [E, N]
    C01 = jnp.zeros((Np, Ep), jnp.int8).at[vertex, edges].add(1)   # [N, E]

    cnts = jnp.zeros((Ep,), jnp.float32).at[edges].add(1.0)        # pairs / edge
    inv_cnt = jnp.where(cnts > 0, 1.0 / jnp.maximum(cnts, 1.0), 0.0)
    degEp = jnp.zeros((Ep, 1), jnp.float32).at[:E].set(degE.reshape(E, 1))
    degVp = jnp.zeros((Np, 1), jnp.float32).at[:N].set(degV.reshape(N, 1))
    scale_e = inv_cnt.reshape(Ep, 1) * degEp                       # f32 [Ep,1]

    def cparams():
        return pltpu.CompilerParams(
            dimension_semantics=("parallel", "arbitrary"),
            vmem_limit_bytes=_VMEM_LIMIT)

    # ---- 1) XW = X @ Wt   grid (N tiles, F_in reduction last) --------------
    xw = pl.pallas_call(
        xw_kernel,
        out_shape=jax.ShapeDtypeStruct((Np, HCp), jnp.bfloat16),
        grid_spec=pltpu.PrefetchScalarGridSpec(
            num_scalar_prefetch=0, grid=(n_tiles, f_tiles),
            in_specs=[pl.BlockSpec((tn, tf), lambda i, k: (i, k)),
                      pl.BlockSpec((tf, HCp), lambda i, k: (k, 0))],
            out_specs=pl.BlockSpec((tn, HCp), lambda i, k: (i, 0)),
            scratch_shapes=[pltpu.VMEM((tn, HCp), jnp.float32)]),
        compiler_params=cparams(),
    )(Xb, Wtb)

    # ---- 2) Xe = scale_e * (B01 @ XW)   grid (E tiles, N reduction last) ---
    xw_resident = (2 * Np * HCp * 2) <= _RESIDENT_BUDGET   # 2x double-buffer, bf16
    xw_spec = (pl.BlockSpec((Np, HCp), lambda e, k: (0, 0)) if xw_resident
               else pl.BlockSpec((tn, HCp), lambda e, k: (k, 0)))
    xe = pl.pallas_call(
        functools.partial(edge_agg_kernel, k_rows=tn, resident=xw_resident),
        out_shape=jax.ShapeDtypeStruct((Ep, HCp), jnp.bfloat16),
        grid_spec=pltpu.PrefetchScalarGridSpec(
            num_scalar_prefetch=0, grid=(e_tiles, n_tiles),
            in_specs=[pl.BlockSpec((te, tn), lambda e, k: (e, k)),
                      xw_spec,
                      pl.BlockSpec((te, 1), lambda e, k: (e, 0))],
            out_specs=pl.BlockSpec((te, HCp), lambda e, k: (e, 0)),
            scratch_shapes=[pltpu.VMEM((te, HCp), jnp.float32)]),
        compiler_params=cparams(),
    )(B01, xw, scale_e)

    # ---- 3) out = normalize(degV * (C01 @ Xe))  grid (N tiles, E reduction) -
    xe_resident = (2 * Ep * HCp * 2) <= _RESIDENT_BUDGET
    xe_spec = (pl.BlockSpec((Ep, HCp), lambda n, k: (0, 0)) if xe_resident
               else pl.BlockSpec((te, HCp), lambda n, k: (k, 0)))
    outp = pl.pallas_call(
        functools.partial(node_agg_kernel, k_rows=te, resident=xe_resident,
                          use_norm=use_norm),
        out_shape=jax.ShapeDtypeStruct((Np, HCp), jnp.bfloat16),
        grid_spec=pltpu.PrefetchScalarGridSpec(
            num_scalar_prefetch=0, grid=(n_tiles, e_tiles),
            in_specs=[pl.BlockSpec((tn, te), lambda n, k: (n, k)),
                      xe_spec,
                      pl.BlockSpec((tn, 1), lambda n, k: (n, 0))],
            out_specs=pl.BlockSpec((tn, HCp), lambda n, k: (n, 0)),
            scratch_shapes=[pltpu.VMEM((tn, HCp), jnp.float32)]),
        compiler_params=cparams(),
    )(C01, xe, degVp)

    return outp[:N, :HC]


# -------------------------------------------------------------- reference ---

def unigcn_reference(X, Wt, vertex, edges, degE, degV, num_edges, *,
                     use_norm=True):
    """Pure-JAX f32 reference mirroring the PyTorch forward."""
    N = X.shape[0]
    P = vertex.shape[0]
    xw = X @ Wt
    xve = xw[vertex]
    sums = jax.ops.segment_sum(xve, edges, num_segments=num_edges)
    cnts = jax.ops.segment_sum(jnp.ones((P,), jnp.float32), edges,
                               num_segments=num_edges)
    xe = sums / jnp.maximum(cnts, 1.0)[:, None]      # scatter mean
    xe = xe * degE
    xev = xe[edges]
    xv = jax.ops.segment_sum(xev, vertex, num_segments=N)   # scatter sum
    xv = xv * degV
    out = xv
    if use_norm:
        norm = jnp.linalg.norm(out, axis=1, keepdims=True)
        scale = jnp.where(norm > 0.0, 1.0 / jnp.maximum(norm, 1e-30), 0.0)
        out = out * scale
    return out


if __name__ == "__main__":
    # Small shapes consistent with the module.
    N = 16            # number of nodes
    in_channels = 32
    heads = 8
    out_channels = 8
    HC = heads * out_channels
    E = 8             # number of hyperedges
    P = 48            # number of (vertex, edge) incidence pairs
    use_norm = True

    key = jax.random.PRNGKey(0)
    kx, kw, kv, ke = jax.random.split(key, 4)

    X = jax.random.normal(kx, (N, in_channels), dtype=jnp.float32)
    # nn.Linear(in_channels, heads*out_channels, bias=False): weight [HC, F_in]
    W = jax.random.normal(kw, (HC, in_channels), dtype=jnp.float32) \
        * (1.0 / jnp.sqrt(in_channels))
    Wt = W.T                                                  # [F_in, HC]
    vertex = jax.random.randint(kv, (P,), 0, N, dtype=jnp.int32)
    edges = jax.random.randint(ke, (P,), 0, E, dtype=jnp.int32)

    # degV / degE precomputed as in the UniGNN repo (part of `args`):
    # degV = deg(v)^-1/2 (isolated node -> 1); degE = mean_e(degV[v])^-1/2.
    ones = jnp.ones((P,), jnp.float32)
    dV = jax.ops.segment_sum(ones, vertex, num_segments=N)
    degV = jnp.where(dV > 0, lax.rsqrt(jnp.maximum(dV, 1.0)), 1.0).reshape(N, 1)
    dEsum = jax.ops.segment_sum(degV[vertex, 0], edges, num_segments=E)
    dEcnt = jax.ops.segment_sum(ones, edges, num_segments=E)
    dEmean = jnp.where(dEcnt > 0, dEsum / jnp.maximum(dEcnt, 1.0), 0.0)
    degE = jnp.where(dEmean > 0, lax.rsqrt(jnp.maximum(dEmean, 1e-30)),
                     0.0).reshape(E, 1)

    out = unigcn_conv(X, Wt, vertex, edges, degE, degV, E, use_norm=use_norm)
    out = jax.block_until_ready(out)

    ref = unigcn_reference(X, Wt, vertex, edges, degE, degV, E,
                           use_norm=use_norm)
    # Kernel matmul operands / intermediates / output are bf16 (f32 MXU
    # accumulation); compare against the f32 reference at bf16 tolerance.
    out_f = out.astype(jnp.float32)
    max_diff = jnp.max(jnp.abs(out_f - ref))
    assert jnp.allclose(out_f, ref, atol=2e-2, rtol=2e-2), \
        f"Pallas kernel mismatch vs reference: max abs diff {max_diff}"

    print("KERNEL_OK")
</pallas_src>

<mosaic_0001>
module attributes {stable_mosaic.version = 11 : i64} {
  func.func @xw_kernel(%arg0: i32, %arg1: i32, %arg2: memref<128x128xbf16, #tpu.memory_space<vmem>>, %arg3: memref<128x128xbf16, #tpu.memory_space<vmem>>, %arg4: memref<128x128xbf16, #tpu.memory_space<vmem>>, %arg5: memref<128x128xf32, #tpu.memory_space<vmem>>) attributes {dimension_semantics = [#tpu.dimension_semantics<parallel>, #tpu.dimension_semantics<arbitrary>], iteration_bounds = array<i64: 1, 1>, scalar_prefetch = 0 : i64, scratch_operands = 1 : i64, tpu.core_type = #tpu.core_type<tc>, window_params = [{transform_indices = @transform_0, window_bounds = array<i64: 128, 128>}, {transform_indices = @transform_1, window_bounds = array<i64: 128, 128>}, {transform_indices = @transform_2, window_bounds = array<i64: 128, 128>}]} {
    %c0_i32 = arith.constant 0 : i32
    %0 = arith.cmpi eq, %arg1, %c0_i32 : i32
    %1 = arith.extui %0 : i1 to i32
    %c0_i32_0 = arith.constant 0 : i32
    %2 = arith.cmpi ne, %1, %c0_i32_0 : i32
    scf.if %2 {
      %cst_10 = arith.constant 0.000000e+00 : f32
      %12 = vector.broadcast %cst_10 : f32 to vector<128x128xf32>
      %c0_11 = arith.constant 0 : index
      %c0_12 = arith.constant 0 : index
      %13 = vector.load %arg5[%c0_11, %c0_12] : memref<128x128xf32, #tpu.memory_space<vmem>>, vector<128x128xf32>
      tpu.vector_store %arg5[%c0_11, %c0_12], %12 {strides = array<i32>} : memref<128x128xf32, #tpu.memory_space<vmem>>, vector<128x128xf32>,
    } else {
    }
    %c0 = arith.constant 0 : index
    %c0_1 = arith.constant 0 : index
    %3 = vector.load %arg5[%c0, %c0_1] : memref<128x128xf32, #tpu.memory_space<vmem>>, vector<128x128xf32>
    %c0_2 = arith.constant 0 : index
    %c0_3 = arith.constant 0 : index
    %4 = vector.load %arg2[%c0_2, %c0_3] : memref<128x128xbf16, #tpu.memory_space<vmem>>, vector<128x128xbf16>
    %c0_4 = arith.constant 0 : index
    %c0_5 = arith.constant 0 : index
    %5 = vector.load %arg3[%c0_4, %c0_5] : memref<128x128xbf16, #tpu.memory_space<vmem>>, vector<128x128xbf16>
    %cst = arith.constant dense<0.000000e+00> : vector<128x128xf32>
    %6 = tpu.matmul %4, %5, %cst {dimension_numbers = #tpu.dot_dimension_numbers<[1], [0], [0], [1], [0, 0, 1, 1], [], []>} : vector<128x128xbf16>, vector<128x128xbf16>, vector<128x128xf32> -> vector<128x128xf32>
    %7 = arith.addf %3, %6 : vector<128x128xf32>
    %c0_6 = arith.constant 0 : index
    %c0_7 = arith.constant 0 : index
    %8 = vector.load %arg5[%c0_6, %c0_7] : memref<128x128xf32, #tpu.memory_space<vmem>>, vector<128x128xf32>
    tpu.vector_store %arg5[%c0_6, %c0_7], %7 {strides = array<i32>} : memref<128x128xf32, #tpu.memory_space<vmem>>, vector<128x128xf32>,
    %c0_i32_8 = arith.constant 0 : i32
    %9 = arith.cmpi eq, %arg1, %c0_i32_8 : i32
    %10 = arith.extui %9 : i1 to i32
    %c0_i32_9 = arith.constant 0 : i32
    %11 = arith.cmpi ne, %10, %c0_i32_9 : i32
    scf.if %11 {
      %c0_10 = arith.constant 0 : index
      %c0_11 = arith.constant 0 : index
      %12 = vector.load %arg5[%c0_10, %c0_11] : memref<128x128xf32, #tpu.memory_space<vmem>>, vector<128x128xf32>
      %13 = arith.truncf %12 : vector<128x128xf32> to vector<128x128xbf16>
      %c0_12 = arith.constant 0 : index
      %c0_13 = arith.constant 0 : index
      %14 = vector.load %arg4[%c0_12, %c0_13] : memref<128x128xbf16, #tpu.memory_space<vmem>>, vector<128x128xbf16>
      tpu.vector_store %arg4[%c0_12, %c0_13], %13 {strides = array<i32>} : memref<128x128xbf16, #tpu.memory_space<vmem>>, vector<128x128xbf16>,
    } else {
    }
    return
  }
  func.func @transform_0(%arg0: i32, %arg1: i32) -> (i32, i32) {
    %c0_i32 = arith.constant 0 : i32
    return %arg0, %arg1 : i32, i32
  }
  func.func @transform_1(%arg0: i32, %arg1: i32) -> (i32, i32) {
    %c0_i32 = arith.constant 0 : i32
    %c0_i32_0 = arith.constant 0 : i32
    return %arg1, %c0_i32 : i32, i32
  }
  func.func @transform_2(%arg0: i32, %arg1: i32) -> (i32, i32) {
    %c0_i32 = arith.constant 0 : i32
    %c0_i32_0 = arith.constant 0 : i32
    return %arg0, %c0_i32 : i32, i32
  }
}

</mosaic_0001>

<bundles_post_ra>
// kernel: tpu_custom_call.1
= control target key start
LH: loop header
LB: loop body
LE: loop exit
PB: predicated region body
PF: predicated region fallthrough
CT: control target
= control target key end

     0   :  { %7 = vsyncpa [#allocation4], 0  ;;  %s632_s0 = inlined_call_operand.hbm [shape: bf16[128,128], index: 0, kind: input, shape index: {}]   ;;  %s633_s1 = inlined_call_operand.hbm [shape: bf16[128,128], index: 1, kind: input, shape index: {}]   ;;  %s634_s2 = inlined_call_operand.hbm [shape: bf16[128,128], index: 2, kind: output, shape index: {}]  }
   0x1   :  { %8 = vsyncpa [#allocation7], 0 }
   0x2   :  { %9 = vsyncpa [#allocation5], 0  ;;  %s14_s11 = sshll.u32 %s632_s0, 4  ;;  %s594_s12 = smov [#allocation3]   ;;  %s15_s11 = int_to_ptr.hbm [resolvable:$true] %s14_s11 }
   0x3   :  { %s16_s13 = sshll.u32 %s594_s12, 4  ;;  %s27_s16 = sshll.u32 %s633_s1, 4  ;;  %s17_s13 = int_to_ptr.vmem [resolvable:$true] %s16_s13  ;;  %s28_s16 = int_to_ptr.hbm [resolvable:$true] %s27_s16 }
   0x4   :  { %s595_s17 = smov 64   ;;  %s596_s18 = smov 4  }
   0x5   :  { %22 = dma.hbm_to_vmem [thread:$0]  %s15_s11, 1024, %s17_s13, [#allocation4], %s595_s17, %s595_s17, %s596_s18  }
   0x6   :  { %s597_s19 = smov [#allocation6]  }
   0x7   :  { %s29_s20 = sshll.u32 %s597_s19, 4  ;;  %s30_s20 = int_to_ptr.vmem [resolvable:$true] %s29_s20 }
   0x8   :  { %35 = dma.hbm_to_vmem [thread:$0]  %s28_s16, 1024, %s30_s20, [#allocation7], %s595_s17, %s595_s17, %s596_s18  }
   0x9   :  { %588 = dma.done.wait [#allocation4], 1024  }
   0xa   :  { %589 = vsyncadd [#allocation4], 4294966272 }
   0xb   :  { %590 = dma.done.wait [#allocation7], 1024  }
   0xc   :  { %591 = vsyncadd [#allocation7], 4294966272  ;;  %v439_v0 = vld [vmem:[#allocation6 + $0x38] sm:$0xff]  ;;  %v438_v1 = vld [vmem:[#allocation6 + $0x30] sm:$0xff]  ;;  %s598_s0 = smov [#allocation8]   ;;  %s346_s23 = sshll.u32 %s634_s2, 4  ;;  %s347_s23 = int_to_ptr.hbm [resolvable:$true] %s346_s23 }
   0xd   :  { %208 = vmatpush.bf16.msra.mxu0 %v439_v0  ;;  %487 = vmatpush.bf16.msra.mxu1 %v439_v0  ;;  %v437_v2 = vld [vmem:[#allocation6 + $0x28] sm:$0xff]  ;;  %v436_v3 = vld [vmem:[#allocation6 + $0x20] sm:$0xff]  ;;  %v435_v4 = vld [vmem:[#allocation6 + $0x18] sm:$0xff]  ;;  %s344_s1 = sshll.u32 %s598_s0, 4  ;;  %s345_s1 = int_to_ptr.vmem [resolvable:$true] %s344_s1 }
   0xe   :  { %488 = vmatpush.bf16.msra.mxu2 %v439_v0  ;;  %489 = vmatpush.bf16.msra.mxu3 %v439_v0  ;;  %v434_v5 = vld [vmem:[#allocation6 + $0x10] sm:$0xff]  ;;  %v433_v6 = vld [vmem:[#allocation6 + $0x8] sm:$0xff]  ;;  %v432_v7 = vld [vmem:[#allocation6] sm:$0xff] }
   0xf   :  { %v424_v8 = vld [vmem:[#allocation3] sm:$0xff]  ;;  %v426_v9 = vld [vmem:[#allocation3 + $0x10] sm:$0xff]  ;;  %v425_v12 = vld [vmem:[#allocation3 + $0x8] sm:$0xff] }
  0x10   :  { %v428_v10 = vld [vmem:[#allocation3 + $0x20] sm:$0xff]  ;;  %v430_v11 = vld [vmem:[#allocation3 + $0x30] sm:$0xff]  ;;  %v427_v13 = vld [vmem:[#allocation3 + $0x18] sm:$0xff] }
  0x11   :  { %209 = vmatpush.bf16.msra.mxu0 %v438_v1  ;;  %490 = vmatpush.bf16.msra.mxu1 %v438_v1  ;;  %v429_v14 = vld [vmem:[#allocation3 + $0x28] sm:$0xff]  ;;  %v431_v15 = vld [vmem:[#allocation3 + $0x38] sm:$0xff] }
  0x12   :  { %491 = vmatpush.bf16.msra.mxu2 %v438_v1  ;;  %492 = vmatpush.bf16.msra.mxu3 %v438_v1 }
  0x15   :  { %210 = vmatpush.bf16.msra.mxu0 %v437_v2  ;;  %493 = vmatpush.bf16.msra.mxu1 %v437_v2 }
  0x16   :  { %494 = vmatpush.bf16.msra.mxu2 %v437_v2  ;;  %495 = vmatpush.bf16.msra.mxu3 %v437_v2 }
  0x19   :  { %211 = vmatpush.bf16.msra.mxu0 %v436_v3  ;;  %496 = vmatpush.bf16.msra.mxu1 %v436_v3 }
  0x1a   :  { %497 = vmatpush.bf16.msra.mxu2 %v436_v3  ;;  %498 = vmatpush.bf16.msra.mxu3 %v436_v3 }
  0x1d   :  { %212 = vmatpush.bf16.msra.mxu0 %v435_v4  ;;  %499 = vmatpush.bf16.msra.mxu1 %v435_v4 }
  0x1e   :  { %500 = vmatpush.bf16.msra.mxu2 %v435_v4  ;;  %501 = vmatpush.bf16.msra.mxu3 %v435_v4 }
  0x21   :  { %213 = vmatpush.bf16.msra.mxu0 %v434_v5  ;;  %502 = vmatpush.bf16.msra.mxu1 %v434_v5 }
  0x22   :  { %503 = vmatpush.bf16.msra.mxu2 %v434_v5  ;;  %504 = vmatpush.bf16.msra.mxu3 %v434_v5 }
  0x25   :  { %214 = vmatpush.bf16.msra.mxu0 %v433_v6  ;;  %505 = vmatpush.bf16.msra.mxu1 %v433_v6 }
  0x26   :  { %506 = vmatpush.bf16.msra.mxu2 %v433_v6  ;;  %507 = vmatpush.bf16.msra.mxu3 %v433_v6 }
  0x29   :  { %215 = vmatpush.bf16.msra.mxu0 %v432_v7  ;;  %508 = vmatpush.bf16.msra.mxu1 %v432_v7 }
  0x2a   :  { %509 = vmatpush.bf16.msra.mxu2 %v432_v7  ;;  %510 = vmatpush.bf16.msra.mxu3 %v432_v7 }
  0x2c   :  { %216 = vmatmul.bf16.vlgmr.msra.gmra.mxu0 %v424_v8  ;;  %226 = vmatmul.bf16.vlgmr.msra.gmra.mxu1 %v426_v9 }
  0x2d   :  { %236 = vmatmul.bf16.vlgmr.msra.gmra.mxu2 %v428_v10  ;;  %246 = vmatmul.bf16.vlgmr.msra.gmra.mxu3 %v430_v11 }
  0x3c   :  { %221 = vmatmul.bf16.gmra.mxu0 %v425_v12  ;;  %231 = vmatmul.bf16.gmra.mxu1 %v427_v13 }
  0x3d   :  { %241 = vmatmul.bf16.gmra.mxu2 %v429_v14  ;;  %251 = vmatmul.bf16.gmra.mxu3 %v431_v15 }
  0xa9   :  { %v217_v16 = vpop.f32.mrf.mxu0  ;;  %v227_v17 = vpop.f32.mrf.mxu1 }
  0xb0   :  { %v237_v18 = vpop.f32.mrf.mxu2  ;;  %v247_v19 = vpop.f32.mrf.mxu3 }
  0xb1   :  { %v219_v20 = vpop.f32.mrf.mxu0  ;;  %v229_v21 = vpop.f32.mrf.mxu1 }
  0xb2   :  { %v443_v22 = vpack.c.bf16 %v219_v20, %v217_v16  ;;  %v453_v23 = vpack.c.bf16 %v229_v21, %v227_v17 }
  0xb4   :  { %444 = vst [vmem:[#allocation8] sm:$0xff] %v443_v22  }
  0xb5   :  { %481 = vst [vmem:[#allocation8 + $0x10] sm:$0xff] %v453_v23  }
  0xb8   :  { %v239_v24 = vpop.f32.mrf.mxu2  ;;  %v249_v25 = vpop.f32.mrf.mxu3 }
  0xb9   :  { %v463_v26 = vpack.c.bf16 %v239_v24, %v237_v18  ;;  %v473_v27 = vpack.c.bf16 %v249_v25, %v247_v19  ;;  %v222_v28 = vpop.f32.mrf.mxu0  ;;  %v232_v29 = vpop.f32.mrf.mxu1 }
  0xbb   :  { %483 = vst [vmem:[#allocation8 + $0x20] sm:$0xff] %v463_v26  }
  0xbc   :  { %485 = vst [vmem:[#allocation8 + $0x30] sm:$0xff] %v473_v27  }
  0xc0   :  { %v242_v30 = vpop.f32.mrf.mxu2  ;;  %v252_v31 = vpop.f32.mrf.mxu3 }
  0xc1   :  { %v224_v32 = vpop.f32.mrf.mxu0  ;;  %v234_v33 = vpop.f32.mrf.mxu1 }
  0xc2   :  { %v448_v34 = vpack.c.bf16 %v224_v32, %v222_v28  ;;  %v458_v35 = vpack.c.bf16 %v234_v33, %v232_v29 }
  0xc4   :  { %480 = vst [vmem:[#allocation8 + $0x8] sm:$0xff] %v448_v34  }
  0xc5   :  { %482 = vst [vmem:[#allocation8 + $0x18] sm:$0xff] %v458_v35  }
  0xc8   :  { %v244_v36 = vpop.f32.mrf.mxu2  ;;  %v254_v37 = vpop.f32.mrf.mxu3 }
  0xc9   :  { %v468_v38 = vpack.c.bf16 %v244_v36, %v242_v30  ;;  %v478_v39 = vpack.c.bf16 %v254_v37, %v252_v31 }
  0xcb   :  { %484 = vst [vmem:[#allocation8 + $0x28] sm:$0xff] %v468_v38  }
  0xcc   :  { %486 = vst [vmem:[#allocation8 + $0x38] sm:$0xff] %v478_v39  }
  0xcd   :  { %352 = dma.vmem_to_hbm [thread:$0]  %s345_s1, 1024, %s347_s23, [#allocation5], %s595_s17, %s595_s17, %s596_s18  }
  0xce   :  { %592 = dma.done.wait [#allocation5], 1024  }
  0xcf   :  { %593 = vsyncadd [#allocation5], 4294966272 }
  0xd0   :  { %357 = vsyncpa [#allocation4], 1 }
  0xd1   :  { %358 = vsyncpa [#allocation7], 1 }
  0xd2   :  { %359 = vsyncpa [#allocation5], 1 }

</bundles_post_ra>
